<compile_context>
chip_gen: v7x
topology: tpu7x:2x2x1
jax: 0.10.0
libtpu: 0.0.40
codegen_flags: <defaults>
</compile_context>

<pallas_src>
import jax
import jax.numpy as jnp
from jax.experimental import pallas as pl
from jax.experimental.pallas import tpu as pltpu

LN_EPS = 1e-5  # PyTorch nn.LayerNorm default


def sentence_re_kernel(seq_ref, pooled_ref, masks_ref, inv_len_ref,
                       dense_w_ref, dense_b_ref, gamma_ref, beta_ref,
                       h2t_w_ref, h2t_b_ref, out_ref):
    seq = seq_ref[...]                                   # [TB, S, D] native dtype
    masks = masks_ref[...]                               # [2, TB, S] same dtype as seq
    inv_len = inv_len_ref[...]                           # [2, TB, 1] f32
    pooled = pooled_ref[...].astype(jnp.float32)         # [TB, D]

    tb, _, d = seq.shape

    # ---- entity averaging: VPU masked sum over the sequence (sublane) axis ----
    # masks are 0/1 so the native-dtype product is exact; accumulate in f32.
    # (Replaces the MXU-hostile batched einsum that pushed seq[b] as the
    #  stationary operand per batch element.)
    e1_sum = jnp.sum((masks[0][:, :, None] * seq).astype(jnp.float32), axis=1)
    e2_sum = jnp.sum((masks[1][:, :, None] * seq).astype(jnp.float32), axis=1)
    ent_avg = (jnp.concatenate([e1_sum, e2_sum], axis=0)          # [2*TB, D] f32
               * inv_len.reshape(2 * tb, 1))

    # ---- fused dense + tanh for both entities (one bf16 MXU weight push) ----
    both = jnp.tanh(
        jnp.dot(ent_avg.astype(dense_w_ref.dtype), dense_w_ref[...],
                preferred_element_type=jnp.float32)
        + dense_b_ref[...])
    e1_h = both[:tb]                                     # [TB, D] f32
    e2_h = both[tb:]                                     # [TB, D] f32

    # ---- LayerNorm over the virtual concat [pooled|e1|e2] (no lane concat) ----
    # Two-pass (centred) variance in f32 for better precision than E[x^2]-E[x]^2.
    inv_n = 1.0 / (3.0 * d)
    mean = jnp.sum(pooled + e1_h + e2_h, axis=-1, keepdims=True) * inv_n
    c0 = pooled - mean
    c1 = e1_h - mean
    c2 = e2_h - mean
    var = jnp.sum(c0 * c0 + c1 * c1 + c2 * c2, axis=-1, keepdims=True) * inv_n
    inv_std = jax.lax.rsqrt(var + LN_EPS)

    gamma = gamma_ref[...]                               # [3, D]
    beta = beta_ref[...]                                 # [3, D]
    wdt = h2t_w_ref.dtype                                # bf16 matmul operands
    n0 = (c0 * inv_std * gamma[0:1] + beta[0:1]).astype(wdt)
    n1 = (c1 * inv_std * gamma[1:2] + beta[1:2]).astype(wdt)
    n2 = (c2 * inv_std * gamma[2:3] + beta[2:3]).astype(wdt)

    # ---- hidden2tag: three [TB,D]x[D,Tpad] bf16 dots, lane-dense output ----
    logits = (jnp.dot(n0, h2t_w_ref[0], preferred_element_type=jnp.float32)
              + jnp.dot(n1, h2t_w_ref[1], preferred_element_type=jnp.float32)
              + jnp.dot(n2, h2t_w_ref[2], preferred_element_type=jnp.float32)
              + h2t_b_ref[...])
    out_ref[...] = logits.astype(out_ref.dtype)


def _pick_batch_tile(b_pad, cap):
    """Largest multiple-of-8 divisor of b_pad that is <= cap (>= 8)."""
    cap = max(8, min(int(cap), b_pad))
    best = 8
    d = 8
    while d <= cap:
        if b_pad % d == 0:
            best = d
        d += 8
    return best


def sentence_re_forward(seq_out, pooled_out, e1_mask, e2_mask, params):
    B, S, D = seq_out.shape
    T = params["h2t_b"].shape[-1]
    T_pad = pl.cdiv(T, 128) * 128                        # lane-dense output width

    # ---- batch padding: grid always pipelines / splits across TensorCores ----
    B_pad = pl.cdiv(B, 8) * 8
    if B_pad != B:
        pad = B_pad - B
        seq_out = jnp.pad(seq_out, ((0, pad), (0, 0), (0, 0)))
        pooled_out = jnp.pad(pooled_out, ((0, pad), (0, 0)))
        e1_mask = jnp.pad(e1_mask, ((0, pad), (0, 0)))
        e2_mask = jnp.pad(e2_mask, ((0, pad), (0, 0)))

    # e-major masks (0/1, exact in bf16) and host-side 1/length (matches the
    # reference's (mask != 0) count; all-zero / padded rows guarded to 1).
    masks_f = jnp.stack([e1_mask, e2_mask], axis=0)                      # [2, B_pad, S]
    length = jnp.sum((masks_f != 0).astype(jnp.float32), axis=2, keepdims=True)
    inv_len = 1.0 / jnp.maximum(length, 1.0)                             # [2, B_pad, 1]
    masks = masks_f.astype(seq_out.dtype)

    # One-time parameter re-layout; matmul weights in bf16 (native MXU path,
    # half the resident VMEM), f32 biases / LN params.
    dense_w = params["dense_w"].astype(jnp.bfloat16)                     # [D, D]
    dense_b = params["dense_b"].reshape(1, D).astype(jnp.float32)        # [1, D]
    gamma = params["ln_gamma"].reshape(3, D).astype(jnp.float32)         # [3, D]
    beta = params["ln_beta"].reshape(3, D).astype(jnp.float32)           # [3, D]
    h2t_w = params["h2t_w"].reshape(3, D, T).astype(jnp.bfloat16)
    h2t_w = jnp.pad(h2t_w, ((0, 0), (0, 0), (0, T_pad - T)))             # [3, D, Tpad]
    h2t_b = jnp.pad(params["h2t_b"].reshape(1, T).astype(jnp.float32),
                    ((0, 0), (0, T_pad - T)))                            # [1, Tpad]

    # ---- per-generation batch-tile sizing from VMEM capacity ----
    seq_bytes = seq_out.dtype.itemsize
    pooled_bytes = pooled_out.dtype.itemsize
    # pipelined (double-buffered) bytes per batch row
    per_row_pipe = (S * D * seq_bytes + 2 * S * seq_bytes + 2 * 4
                    + D * pooled_bytes + T_pad * 4)
    # in-kernel elementwise temporaries per row (masked product + f32 copy)
    per_row_tmp = S * D * (seq_bytes + 4)
    # resident parameters (conservatively counted double-buffered)
    weight_bytes = 2 * (D * D * 2 + D * 4 + 2 * 3 * D * 4
                        + 3 * D * T_pad * 2 + T_pad * 4)

    try:
        vmem_cap = int(pltpu.get_tpu_info().vmem_capacity_bytes)
    except Exception:  # be conservative if the query is unavailable
        vmem_cap = 64 * 1024 * 1024                      # v7x per-core VMEM
    sizing_budget = int(vmem_cap * 0.7)                  # headroom for scratch/spills
    avail = max(sizing_budget - weight_bytes, 2 * per_row_pipe + per_row_tmp)
    tb_cap = avail // (2 * per_row_pipe + per_row_tmp)
    tb = _pick_batch_tile(B_pad, tb_cap)
    if B_pad // tb < 2 and B_pad >= 16:
        # keep grid length >= 2 so megacore (v7x) can split the batch axis
        tb = _pick_batch_tile(B_pad, B_pad // 2)
    grid = (B_pad // tb,)

    kernel = pl.pallas_call(
        sentence_re_kernel,
        out_shape=jax.ShapeDtypeStruct((B_pad, T_pad), jnp.float32),
        grid_spec=pltpu.PrefetchScalarGridSpec(
            num_scalar_prefetch=0,
            grid=grid,
            in_specs=[
                # TODO(synk): on v7x, sweep pipeline_mode=pl.Buffered(3) on the
                # seq spec if the profile shows exposed per-step DMA gaps.
                pl.BlockSpec((tb, S, D), lambda i: (i, 0, 0)),      # sequence_output
                pl.BlockSpec((tb, D), lambda i: (i, 0)),            # pooled_output
                pl.BlockSpec((2, tb, S), lambda i: (0, i, 0)),      # e-major masks
                pl.BlockSpec((2, tb, 1), lambda i: (0, i, 0)),      # 1 / entity length
                pl.BlockSpec((D, D), lambda i: (0, 0)),             # dense_w (resident)
                pl.BlockSpec((1, D), lambda i: (0, 0)),             # dense_b
                pl.BlockSpec((3, D), lambda i: (0, 0)),             # ln gamma
                pl.BlockSpec((3, D), lambda i: (0, 0)),             # ln beta
                pl.BlockSpec((3, D, T_pad), lambda i: (0, 0, 0)),   # hidden2tag W
                pl.BlockSpec((1, T_pad), lambda i: (0, 0)),         # hidden2tag b
            ],
            out_specs=pl.BlockSpec((tb, T_pad), lambda i: (i, 0)),
        ),
        compiler_params=pltpu.CompilerParams(
            dimension_semantics=("parallel",),
            vmem_limit_bytes=int(vmem_cap * 0.9)),
    )
    logits_padded = kernel(seq_out, pooled_out, masks, inv_len,
                           dense_w, dense_b, gamma, beta, h2t_w, h2t_b)
    return logits_padded[:B, :T]


def sentence_re_reference(seq_out, pooled_out, e1_mask, e2_mask, params):
    """Pure-JAX reference mirroring the PyTorch forward (eval mode, f32)."""
    seq = seq_out.astype(jnp.float32)
    pooled = pooled_out.astype(jnp.float32)

    def entity_average(mask):
        m = mask.astype(jnp.float32)
        sum_vector = jnp.einsum("bs,bsd->bd", m, seq)
        length = jnp.sum((mask != 0).astype(jnp.float32), axis=1, keepdims=True)
        return sum_vector / jnp.maximum(length, 1.0)

    e1_h = jnp.tanh(entity_average(e1_mask) @ params["dense_w"] + params["dense_b"])
    e2_h = jnp.tanh(entity_average(e2_mask) @ params["dense_w"] + params["dense_b"])
    concat_h = jnp.concatenate([pooled, e1_h, e2_h], axis=-1)
    mean = jnp.mean(concat_h, axis=-1, keepdims=True)
    var = jnp.mean(jnp.square(concat_h - mean), axis=-1, keepdims=True)
    normed = (concat_h - mean) / jnp.sqrt(var + LN_EPS)
    normed = normed * params["ln_gamma"] + params["ln_beta"]
    return normed @ params["h2t_w"] + params["h2t_b"]


if __name__ == "__main__":
    # batch (non-multiple-of-8 to exercise padding), max_seq_len, dim, tags
    B, S, D, T = 14, 8, 32, 8

    key = jax.random.PRNGKey(0)
    ks = jax.random.split(key, 8)

    # "BERT outputs" (synthetic, deterministic). Sequence output kept in bf16:
    # the kernel consumes it without upcasting (bf16 VPU/MXU, f32 accumulation).
    sequence_output = jax.random.normal(ks[0], (B, S, D), jnp.float32).astype(jnp.bfloat16)
    pooled_output = jax.random.normal(ks[1], (B, D), jnp.float32).astype(jnp.bfloat16)

    # entity masks: contiguous spans of 1s
    e1_mask = jnp.zeros((B, S), jnp.float32).at[:, 1:3].set(1.0)
    e2_mask = jnp.zeros((B, S), jnp.float32).at[:, 4:7].set(1.0)

    # deterministic parameter init (nn.Linear weights stored as [in, out],
    # i.e. already transposed relative to PyTorch's [out, in])
    params = {
        "dense_w": 0.05 * jax.random.normal(ks[2], (D, D), jnp.float32),
        "dense_b": 0.05 * jax.random.normal(ks[3], (1, D), jnp.float32),
        "ln_gamma": 1.0 + 0.1 * jax.random.normal(ks[6], (1, 3 * D), jnp.float32),
        "ln_beta": 0.1 * jax.random.normal(ks[7], (1, 3 * D), jnp.float32),
        "h2t_w": 0.05 * jax.random.normal(ks[4], (3 * D, T), jnp.float32),
        "h2t_b": 0.05 * jax.random.normal(ks[5], (1, T), jnp.float32),
    }

    logits = sentence_re_forward(sequence_output, pooled_output,
                                 e1_mask, e2_mask, params)
    logits = jax.block_until_ready(logits)

    ref = sentence_re_reference(sequence_output, pooled_output,
                                e1_mask, e2_mask, params)
    assert logits.shape == (B, T)
    err = jnp.max(jnp.abs(logits - ref))
    # Tolerance budget: bf16 matmul operands/weights (~2^-9 relative) vs the
    # f32 reference; well within 2e-2 for these magnitudes.
    assert jnp.allclose(logits, ref, atol=2e-2, rtol=2e-2), (
        f"mismatch: max abs err {err}")

    print("KERNEL_OK")
</pallas_src>

<mosaic_0001>
module attributes {stable_mosaic.version = 11 : i64} {
  func.func @sentence_re_kernel(%arg0: i32, %arg1: memref<8x8x32xbf16, #tpu.memory_space<vmem>>, %arg2: memref<8x32xbf16, #tpu.memory_space<vmem>>, %arg3: memref<2x8x8xbf16, #tpu.memory_space<vmem>>, %arg4: memref<2x8x1xf32, #tpu.memory_space<vmem>>, %arg5: memref<32x32xbf16, #tpu.memory_space<vmem>>, %arg6: memref<1x32xf32, #tpu.memory_space<vmem>>, %arg7: memref<3x32xf32, #tpu.memory_space<vmem>>, %arg8: memref<3x32xf32, #tpu.memory_space<vmem>>, %arg9: memref<3x32x128xbf16, #tpu.memory_space<vmem>>, %arg10: memref<1x128xf32, #tpu.memory_space<vmem>>, %arg11: memref<8x128xf32, #tpu.memory_space<vmem>>) attributes {dimension_semantics = [#tpu.dimension_semantics<parallel>], iteration_bounds = array<i64: 2>, scalar_prefetch = 0 : i64, scratch_operands = 0 : i64, tpu.core_type = #tpu.core_type<tc>, window_params = [{transform_indices = @transform_0, window_bounds = array<i64: 8, 8, 32>}, {transform_indices = @transform_1, window_bounds = array<i64: 8, 32>}, {transform_indices = @transform_2, window_bounds = array<i64: 2, 8, 8>}, {transform_indices = @transform_3, window_bounds = array<i64: 2, 8, 1>}, {pipeline_mode = #tpu.pipeline_mode<synchronous>, transform_indices = @transform_4, window_bounds = array<i64: 32, 32>}, {pipeline_mode = #tpu.pipeline_mode<synchronous>, transform_indices = @transform_5, window_bounds = array<i64: 1, 32>}, {pipeline_mode = #tpu.pipeline_mode<synchronous>, transform_indices = @transform_6, window_bounds = array<i64: 3, 32>}, {pipeline_mode = #tpu.pipeline_mode<synchronous>, transform_indices = @transform_7, window_bounds = array<i64: 3, 32>}, {pipeline_mode = #tpu.pipeline_mode<synchronous>, transform_indices = @transform_8, window_bounds = array<i64: 3, 32, 128>}, {pipeline_mode = #tpu.pipeline_mode<synchronous>, transform_indices = @transform_9, window_bounds = array<i64: 1, 128>}, {transform_indices = @transform_10, window_bounds = array<i64: 8, 128>}]} {
    %c0 = arith.constant 0 : index
    %c0_0 = arith.constant 0 : index
    %c0_1 = arith.constant 0 : index
    %0 = vector.load %arg1[%c0, %c0_0, %c0_1] : memref<8x8x32xbf16, #tpu.memory_space<vmem>>, vector<8x8x32xbf16>
    %c0_2 = arith.constant 0 : index
    %c0_3 = arith.constant 0 : index
    %c0_4 = arith.constant 0 : index
    %1 = vector.load %arg3[%c0_2, %c0_3, %c0_4] : memref<2x8x8xbf16, #tpu.memory_space<vmem>>, vector<2x8x8xbf16>
    %c0_5 = arith.constant 0 : index
    %c0_6 = arith.constant 0 : index
    %c0_7 = arith.constant 0 : index
    %2 = vector.load %arg4[%c0_5, %c0_6, %c0_7] : memref<2x8x1xf32, #tpu.memory_space<vmem>>, vector<2x8x1xf32>
    %c0_8 = arith.constant 0 : index
    %c0_9 = arith.constant 0 : index
    %3 = vector.load %arg2[%c0_8, %c0_9] : memref<8x32xbf16, #tpu.memory_space<vmem>>, vector<8x32xbf16>
    %4 = arith.extf %3 : vector<8x32xbf16> to vector<8x32xf32>
    %5 = vector.extract_strided_slice %1 {offsets = [0, 0, 0], sizes = [1, 8, 8], strides = [1, 1, 1]} : vector<2x8x8xbf16> to vector<1x8x8xbf16>
    %6 = vector.shape_cast %5 : vector<1x8x8xbf16> to vector<8x8xbf16>
    %7 = vector.shape_cast %6 : vector<8x8xbf16> to vector<8x8x1xbf16>
    %8 = vector.broadcast %7 : vector<8x8x1xbf16> to vector<8x8x32xbf16>
    %9 = arith.mulf %8, %0 : vector<8x8x32xbf16>
    %10 = arith.extf %9 : vector<8x8x32xbf16> to vector<8x8x32xf32>
    %cst = arith.constant dense<0.000000e+00> : vector<8x32xf32>
    %11 = vector.multi_reduction <add>, %10, %cst [1] : vector<8x8x32xf32> to vector<8x32xf32>
    %12 = vector.extract_strided_slice %1 {offsets = [1, 0, 0], sizes = [1, 8, 8], strides = [1, 1, 1]} : vector<2x8x8xbf16> to vector<1x8x8xbf16>
    %13 = vector.shape_cast %12 : vector<1x8x8xbf16> to vector<8x8xbf16>
    %14 = vector.shape_cast %13 : vector<8x8xbf16> to vector<8x8x1xbf16>
    %15 = vector.broadcast %14 : vector<8x8x1xbf16> to vector<8x8x32xbf16>
    %16 = arith.mulf %15, %0 : vector<8x8x32xbf16>
    %17 = arith.extf %16 : vector<8x8x32xbf16> to vector<8x8x32xf32>
    %cst_10 = arith.constant dense<0.000000e+00> : vector<8x32xf32>
    %18 = vector.multi_reduction <add>, %17, %cst_10 [1] : vector<8x8x32xf32> to vector<8x32xf32>
    %19 = tpu.concatenate %11, %18 in 0 : vector<8x32xf32>, vector<8x32xf32> -> vector<16x32xf32>
    %20 = vector.shape_cast %2 : vector<2x8x1xf32> to vector<16x1xf32>
    %21 = vector.broadcast %20 : vector<16x1xf32> to vector<16x32xf32>
    %22 = arith.mulf %19, %21 : vector<16x32xf32>
    %23 = arith.truncf %22 : vector<16x32xf32> to vector<16x32xbf16>
    %c0_11 = arith.constant 0 : index
    %c0_12 = arith.constant 0 : index
    %24 = vector.load %arg5[%c0_11, %c0_12] : memref<32x32xbf16, #tpu.memory_space<vmem>>, vector<32x32xbf16>
    %cst_13 = arith.constant dense<0.000000e+00> : vector<16x32xf32>
    %25 = tpu.matmul %23, %24, %cst_13 {dimension_numbers = #tpu.dot_dimension_numbers<[1], [0], [0], [1], [0, 0, 1, 1], [], []>} : vector<16x32xbf16>, vector<32x32xbf16>, vector<16x32xf32> -> vector<16x32xf32>
    %c0_14 = arith.constant 0 : index
    %c0_15 = arith.constant 0 : index
    %26 = vector.load %arg6[%c0_14, %c0_15] : memref<1x32xf32, #tpu.memory_space<vmem>>, vector<1x32xf32>
    %27 = vector.broadcast %26 : vector<1x32xf32> to vector<16x32xf32>
    %28 = arith.addf %25, %27 : vector<16x32xf32>
    %29 = math.tanh %28 : vector<16x32xf32>
    %30 = vector.extract_strided_slice %29 {offsets = [0, 0], sizes = [8, 32], strides = [1, 1]} : vector<16x32xf32> to vector<8x32xf32>
    %31 = vector.extract_strided_slice %29 {offsets = [8, 0], sizes = [8, 32], strides = [1, 1]} : vector<16x32xf32> to vector<8x32xf32>
    %32 = arith.addf %4, %30 : vector<8x32xf32>
    %33 = arith.addf %32, %31 : vector<8x32xf32>
    %cst_16 = arith.constant dense<0.000000e+00> : vector<8xf32>
    %34 = vector.multi_reduction <add>, %33, %cst_16 [1] : vector<8x32xf32> to vector<8xf32>
    %35 = vector.shape_cast %34 : vector<8xf32> to vector<8x1xf32>
    %cst_17 = arith.constant 0.010416667 : f32
    %36 = vector.broadcast %cst_17 : f32 to vector<8x1xf32>
    %37 = arith.mulf %35, %36 : vector<8x1xf32>
    %38 = vector.broadcast %37 : vector<8x1xf32> to vector<8x32xf32>
    %39 = arith.subf %4, %38 : vector<8x32xf32>
    %40 = vector.broadcast %37 : vector<8x1xf32> to vector<8x32xf32>
    %41 = arith.subf %30, %40 : vector<8x32xf32>
    %42 = vector.broadcast %37 : vector<8x1xf32> to vector<8x32xf32>
    %43 = arith.subf %31, %42 : vector<8x32xf32>
    %44 = arith.mulf %39, %39 : vector<8x32xf32>
    %45 = arith.mulf %41, %41 : vector<8x32xf32>
    %46 = arith.addf %44, %45 : vector<8x32xf32>
    %47 = arith.mulf %43, %43 : vector<8x32xf32>
    %48 = arith.addf %46, %47 : vector<8x32xf32>
    %cst_18 = arith.constant dense<0.000000e+00> : vector<8xf32>
    %49 = vector.multi_reduction <add>, %48, %cst_18 [1] : vector<8x32xf32> to vector<8xf32>
    %50 = vector.shape_cast %49 : vector<8xf32> to vector<8x1xf32>
    %cst_19 = arith.constant 0.010416667 : f32
    %51 = vector.broadcast %cst_19 : f32 to vector<8x1xf32>
    %52 = arith.mulf %50, %51 : vector<8x1xf32>
    %cst_20 = arith.constant 9.99999974E-6 : f32
    %53 = vector.broadcast %cst_20 : f32 to vector<8x1xf32>
    %54 = arith.addf %52, %53 : vector<8x1xf32>
    %55 = math.rsqrt %54 : vector<8x1xf32>
    %c0_21 = arith.constant 0 : index
    %c0_22 = arith.constant 0 : index
    %56 = vector.load %arg7[%c0_21, %c0_22] : memref<3x32xf32, #tpu.memory_space<vmem>>, vector<3x32xf32>
    %c0_23 = arith.constant 0 : index
    %c0_24 = arith.constant 0 : index
    %57 = vector.load %arg8[%c0_23, %c0_24] : memref<3x32xf32, #tpu.memory_space<vmem>>, vector<3x32xf32>
    %58 = vector.broadcast %55 : vector<8x1xf32> to vector<8x32xf32>
    %59 = arith.mulf %39, %58 : vector<8x32xf32>
    %60 = vector.extract_strided_slice %56 {offsets = [0, 0], sizes = [1, 32], strides = [1, 1]} : vector<3x32xf32> to vector<1x32xf32>
    %61 = vector.broadcast %60 : vector<1x32xf32> to vector<8x32xf32>
    %62 = arith.mulf %59, %61 : vector<8x32xf32>
    %63 = vector.extract_strided_slice %57 {offsets = [0, 0], sizes = [1, 32], strides = [1, 1]} : vector<3x32xf32> to vector<1x32xf32>
    %64 = vector.broadcast %63 : vector<1x32xf32> to vector<8x32xf32>
    %65 = arith.addf %62, %64 : vector<8x32xf32>
    %66 = arith.truncf %65 : vector<8x32xf32> to vector<8x32xbf16>
    %67 = vector.broadcast %55 : vector<8x1xf32> to vector<8x32xf32>
    %68 = arith.mulf %41, %67 : vector<8x32xf32>
    %69 = vector.extract_strided_slice %56 {offsets = [1, 0], sizes = [1, 32], strides = [1, 1]} : vector<3x32xf32> to vector<1x32xf32>
    %70 = vector.broadcast %69 : vector<1x32xf32> to vector<8x32xf32>
    %71 = arith.mulf %68, %70 : vector<8x32xf32>
    %72 = vector.extract_strided_slice %57 {offsets = [1, 0], sizes = [1, 32], strides = [1, 1]} : vector<3x32xf32> to vector<1x32xf32>
    %73 = vector.broadcast %72 : vector<1x32xf32> to vector<8x32xf32>
    %74 = arith.addf %71, %73 : vector<8x32xf32>
    %75 = arith.truncf %74 : vector<8x32xf32> to vector<8x32xbf16>
    %76 = vector.broadcast %55 : vector<8x1xf32> to vector<8x32xf32>
    %77 = arith.mulf %43, %76 : vector<8x32xf32>
    %78 = vector.extract_strided_slice %56 {offsets = [2, 0], sizes = [1, 32], strides = [1, 1]} : vector<3x32xf32> to vector<1x32xf32>
    %79 = vector.broadcast %78 : vector<1x32xf32> to vector<8x32xf32>
    %80 = arith.mulf %77, %79 : vector<8x32xf32>
    %81 = vector.extract_strided_slice %57 {offsets = [2, 0], sizes = [1, 32], strides = [1, 1]} : vector<3x32xf32> to vector<1x32xf32>
    %82 = vector.broadcast %81 : vector<1x32xf32> to vector<8x32xf32>
    %83 = arith.addf %80, %82 : vector<8x32xf32>
    %84 = arith.truncf %83 : vector<8x32xf32> to vector<8x32xbf16>
    %c0_25 = arith.constant 0 : index
    %c0_26 = arith.constant 0 : index
    %c0_27 = arith.constant 0 : index
    %85 = vector.load %arg9[%c0_25, %c0_26, %c0_27] : memref<3x32x128xbf16, #tpu.memory_space<vmem>>, vector<1x32x128xbf16>
    %86 = vector.shape_cast %85 : vector<1x32x128xbf16> to vector<32x128xbf16>
    %cst_28 = arith.constant dense<0.000000e+00> : vector<8x128xf32>
    %87 = tpu.matmul %66, %86, %cst_28 {dimension_numbers = #tpu.dot_dimension_numbers<[1], [0], [0], [1], [0, 0, 1, 1], [], []>} : vector<8x32xbf16>, vector<32x128xbf16>, vector<8x128xf32> -> vector<8x128xf32>
    %c1 = arith.constant 1 : index
    %c0_29 = arith.constant 0 : index
    %c0_30 = arith.constant 0 : index
    %88 = vector.load %arg9[%c1, %c0_29, %c0_30] : memref<3x32x128xbf16, #tpu.memory_space<vmem>>, vector<1x32x128xbf16>
    %89 = vector.shape_cast %88 : vector<1x32x128xbf16> to vector<32x128xbf16>
    %cst_31 = arith.constant dense<0.000000e+00> : vector<8x128xf32>
    %90 = tpu.matmul %75, %89, %cst_31 {dimension_numbers = #tpu.dot_dimension_numbers<[1], [0], [0], [1], [0, 0, 1, 1], [], []>} : vector<8x32xbf16>, vector<32x128xbf16>, vector<8x128xf32> -> vector<8x128xf32>
    %91 = arith.addf %87, %90 : vector<8x128xf32>
    %c2 = arith.constant 2 : index
    %c0_32 = arith.constant 0 : index
    %c0_33 = arith.constant 0 : index
    %92 = vector.load %arg9[%c2, %c0_32, %c0_33] : memref<3x32x128xbf16, #tpu.memory_space<vmem>>, vector<1x32x128xbf16>
    %93 = vector.shape_cast %92 : vector<1x32x128xbf16> to vector<32x128xbf16>
    %cst_34 = arith.constant dense<0.000000e+00> : vector<8x128xf32>
    %94 = tpu.matmul %84, %93, %cst_34 {dimension_numbers = #tpu.dot_dimension_numbers<[1], [0], [0], [1], [0, 0, 1, 1], [], []>} : vector<8x32xbf16>, vector<32x128xbf16>, vector<8x128xf32> -> vector<8x128xf32>
    %95 = arith.addf %91, %94 : vector<8x128xf32>
    %c0_35 = arith.constant 0 : index
    %c0_36 = arith.constant 0 : index
    %96 = vector.load %arg10[%c0_35, %c0_36] : memref<1x128xf32, #tpu.memory_space<vmem>>, vector<1x128xf32>
    %97 = vector.broadcast %96 : vector<1x128xf32> to vector<8x128xf32>
    %98 = arith.addf %95, %97 : vector<8x128xf32>
    %c0_37 = arith.constant 0 : index
    %c0_38 = arith.constant 0 : index
    %99 = vector.load %arg11[%c0_37, %c0_38] : memref<8x128xf32, #tpu.memory_space<vmem>>, vector<8x128xf32>
    tpu.vector_store %arg11[%c0_37, %c0_38], %98 {strides = array<i32>} : memref<8x128xf32, #tpu.memory_space<vmem>>, vector<8x128xf32>,
    return
  }
  func.func @transform_0(%arg0: i32) -> (i32, i32, i32) {
    %c0_i32 = arith.constant 0 : i32
    %c0_i32_0 = arith.constant 0 : i32
    %c0_i32_1 = arith.constant 0 : i32
    return %arg0, %c0_i32, %c0_i32_0 : i32, i32, i32
  }
  func.func @transform_1(%arg0: i32) -> (i32, i32) {
    %c0_i32 = arith.constant 0 : i32
    %c0_i32_0 = arith.constant 0 : i32
    return %arg0, %c0_i32 : i32, i32
  }
  func.func @transform_2(%arg0: i32) -> (i32, i32, i32) {
    %c0_i32 = arith.constant 0 : i32
    %c0_i32_0 = arith.constant 0 : i32
    %c0_i32_1 = arith.constant 0 : i32
    return %c0_i32, %arg0, %c0_i32_0 : i32, i32, i32
  }
  func.func @transform_3(%arg0: i32) -> (i32, i32, i32) {
    %c0_i32 = arith.constant 0 : i32
    %c0_i32_0 = arith.constant 0 : i32
    %c0_i32_1 = arith.constant 0 : i32
    return %c0_i32, %arg0, %c0_i32_0 : i32, i32, i32
  }
  func.func @transform_4(%arg0: i32) -> (i32, i32) {
    %c0_i32 = arith.constant 0 : i32
    %c0_i32_0 = arith.constant 0 : i32
    %c0_i32_1 = arith.constant 0 : i32
    return %c0_i32, %c0_i32_0 : i32, i32
  }
  func.func @transform_5(%arg0: i32) -> (i32, i32) {
    %c0_i32 = arith.constant 0 : i32
    %c0_i32_0 = arith.constant 0 : i32
    %c0_i32_1 = arith.constant 0 : i32
    return %c0_i32, %c0_i32_0 : i32, i32
  }
  func.func @transform_6(%arg0: i32) -> (i32, i32) {
    %c0_i32 = arith.constant 0 : i32
    %c0_i32_0 = arith.constant 0 : i32
    %c0_i32_1 = arith.constant 0 : i32
    return %c0_i32, %c0_i32_0 : i32, i32
  }
  func.func @transform_7(%arg0: i32) -> (i32, i32) {
    %c0_i32 = arith.constant 0 : i32
    %c0_i32_0 = arith.constant 0 : i32
    %c0_i32_1 = arith.constant 0 : i32
    return %c0_i32, %c0_i32_0 : i32, i32
  }
  func.func @transform_8(%arg0: i32) -> (i32, i32, i32) {
    %c0_i32 = arith.constant 0 : i32
    %c0_i32_0 = arith.constant 0 : i32
    %c0_i32_1 = arith.constant 0 : i32
    %c0_i32_2 = arith.constant 0 : i32
    return %c0_i32, %c0_i32_0, %c0_i32_1 : i32, i32, i32
  }
  func.func @transform_9(%arg0: i32) -> (i32, i32) {
    %c0_i32 = arith.constant 0 : i32
    %c0_i32_0 = arith.constant 0 : i32
    %c0_i32_1 = arith.constant 0 : i32
    return %c0_i32, %c0_i32_0 : i32, i32
  }
  func.func @transform_10(%arg0: i32) -> (i32, i32) {
    %c0_i32 = arith.constant 0 : i32
    %c0_i32_0 = arith.constant 0 : i32
    return %arg0, %c0_i32 : i32, i32
  }
}

</mosaic_0001>

<bundles_post_ra>
// kernel: tpu_custom_call.1
= control target key start
LH: loop header
LB: loop body
LE: loop exit
PB: predicated region body
PF: predicated region fallthrough
CT: control target
= control target key end

     0   :  { %15 = vsyncpa [#allocation3], 0  ;;  %s1915_s0 = inlined_call_operand.hbm [shape: bf16[16,8,32], index: 0, kind: input, shape index: {}]   ;;  %s1916_s1 = inlined_call_operand.vmem [shape: bf16[16,32], index: 1, kind: input, shape index: {}]   ;;  %s1917_s2 = inlined_call_operand.vmem [shape: bf16[2,16,8], index: 2, kind: input, shape index: {}]   ;;  %s1918_s3 = inlined_call_operand.vmem [shape: f32[2,16,1], index: 3, kind: input, shape index: {}]   ;;  %s1919_s4 = inlined_call_operand.vmem [shape: bf16[32,32], index: 4, kind: input, shape index: {}]   ;;  %s1920_s5 = inlined_call_operand.vmem [shape: f32[1,32], index: 5, kind: input, shape index: {}]   ;;  %s1921_s6 = inlined_call_operand.vmem [shape: f32[3,32], index: 6, kind: input, shape index: {}]   ;;  %s1922_s7 = inlined_call_operand.vmem [shape: f32[3,32], index: 7, kind: input, shape index: {}]   ;;  %s1923_s8 = inlined_call_operand.vmem [shape: bf16[3,32,128], index: 8, kind: input, shape index: {}]   ;;  %s1924_s9 = inlined_call_operand.vmem [shape: f32[1,128], index: 9, kind: input, shape index: {}]   ;;  %s1925_s10 = inlined_call_operand.hbm [shape: f32[16,128], index: 10, kind: output, shape index: {}]  }
   0x1   :  { %17 = vsyncpa [#allocation3 + $0x1], 0 }
   0x2   :  { %18 = vsyncpa [#allocation4], 0 }
   0x3   :  { %20 = vsyncpa [#allocation4 + $0x1], 0  ;;  %s1610_s13 = smov 0   ;;  %s1612_s14 = smov 0  }
   0x4   :  { %s1614_s15 = smov 0   ;;  %s1616_s16 = smov 0  }
   0x5 LB: > { %1931 = sst [smem:[#allocation10_spill]] %s1542_s15  ;;  %s1631_s17 = sadd.s32 4294967295, %s1546_s16   ;;  %s1546_s16 = sphi %s1616_s16, %s1941_s16   ;;  %s1542_s15 = sphi %s1614_s15, %s1943_s15   ;;  %s1538_s14 = sphi %s1612_s14, %s1945_s14   ;;  %s1534_s13 = sphi %s1610_s13, %s1944_s13  }
   0x6   : > { %s1303_s18 = sadd.s32 4294967294, %s1546_s16   ;;  %s1635_s19 = sadd.s32 1, %s1546_s16  }
   0x7   : > { %1932 = sst [smem:[#allocation11_spill]] %s1635_s19  ;;  %s33_s20 = sadd.s32 1, %s1542_s15 }
   0x8   : > { %s30_s21 = ssub.s32 %s1546_s16, %s1635_s19  ;;  %p40_p0 = scmp.ne.s32.totalorder %s1542_s15, %s1538_s14 }
   0x9   : > { %p31_p1 = scmp.eq.s32.totalorder %s30_s21, 0  ;;  %p41_p2 = scmp.eq.s32.totalorder %s1546_s16, 0 }
   0xa   : > { %p46_p3 = scmp.ne.s32.totalorder %s1538_s14, %s1534_s13  ;;  %p47_p4 = scmp.eq.s32.totalorder %s1631_s17, 0 }
   0xb   : > { %s1647_s22 = scalar_select %p31_p1, %s1542_s15, %s33_s20  }
   0xc   : > { %p1649_p5 = por %p41_p2, %p40_p0  ;;  %p1653_p6 = por %p47_p4, %p46_p3 }
   0xd   : > { %1933 = sst [smem:[#allocation12_spill]] %s1647_s22  ;;  %p274_p7 = scmp.eq.s32.totalorder %s1631_s17, 1 }
   0xe   : > { %p280_p8 = scmp.eq.s32.totalorder %s1303_s18, 1  ;;  %p1929_p11 = scmp.ge.s32.totalorder %s1546_s16, 2 }
   0xf   : > { %p1658_p9 = por %p274_p7, %p40_p0  ;;  %s1670_s27 = sand.u32 (!%p1929_p11), 1, %s1542_s15  }
  0x10   : > { %p1662_p10 = por %p280_p8, %p46_p3  ;;  %314 = sbr.rel (%p1929_p11) target bundleno = 59 (0x3b), region = 40 }
  0x11   : > { %s1936_s25 = scalar_select %p1658_p9, 1, 0 }
  0x12   : > { %s1937_s26 = scalar_select %p1662_p10, 1, 0 }
  0x13   : > { %s1345_s28 = sshll.u32 (!%p1929_p11), %s1546_s16, 9  ;;  %s1306_s29 = sshll.u32 (!%p1929_p11), %s1670_s27, 5 }
  0x14   : > { %s1677_s12 = scalar_lea.hbm (!%p1929_p11), %s1915_s0, %s1345_s28  ;;  %s322_s18 = scalar_lea.vmem (!%p1929_p11), [#allocation2], %s1306_s29 }
  0x15   : > { %s329_s20 = sshll.u32 (!%p1929_p11), %s322_s18, 4  ;;  %s319_s21 = scalar_lea.sflag (!%p1929_p11), [#allocation3], %s1670_s27  ;;  %s1679_s20 = int_to_ptr.vmem [resolvable:$true] %s329_s20 }
  0x16   : > { %s1452_s22 = scalar_lea.hbm (!%p1929_p11), %s1677_s12, 512  ;;  %s1456_s30 = scalar_lea.hbm (!%p1929_p11), %s1915_s0, 1024 }
  0x17   : > { %p1453_p12 = scmp.ne.s32.totalorder %s1677_s12, %s1452_s22  ;;  %p1457_p1 = scmp.lt.u32.totalorder %s1677_s12, %s1915_s0 }
  0x18   : > { %p1458_p2 = scmp.lt.u32.totalorder %s1456_s30, %s1452_s22  ;;  %p1460_p4 = scmp.lt.u32.totalorder %s1452_s22, %s1677_s12 }
  0x19   : > { %p1454_p13 = pnand %p1453_p12, %p1649_p5 }
  0x1a   : > { %p1459_p3 = por %p1458_p2, %p1457_p1 }
  0x1b   : > { %p1455_p0 = pneg %p1454_p13 }
  0x1c   : > { %p1461_p7 = por %p1460_p4, %p1459_p3 }
  0x1e   : > { %p1462_p8 = pnand %p1461_p7, %p1455_p0 }
  0x20   : > { %1465 = shalt.err (!%p1462_p8)
}
  0x21   : > { %s1466_s29 = scalar_lea.vmem %s1679_s20, 512  ;;  %s1548_s15 = smov [#allocation2]  }
  0x22   : > { %p1467_p12 = scmp.ne.s32.totalorder %s1679_s20, %s1466_s29  ;;  %s1470_s19 = sshll.u32 %s1548_s15, 4  ;;  %s1471_s19 = int_to_ptr.vmem [resolvable:$false] %s1470_s19 }
  0x23   : > { %s1472_s18 = scalar_lea.vmem %s1471_s19, 1024  ;;  %p1473_p10 = scmp.lt.s32.totalorder %s1679_s20, %s1471_s19 }
  0x24   : > { %p1468_p13 = pnand %p1467_p12, %p1649_p5  ;;  %p1474_p9 = scmp.lt.s32.totalorder %s1472_s18, %s1466_s29 }
  0x26   : > { %p1469_p11 = pneg %p1468_p13  ;;  %p1475_p1 = por %p1474_p9, %p1473_p10 }
  0x28   : > { %p1476_p2 = pnand %p1475_p1, %p1469_p11 }
  0x2a   : > { %1479 = shalt.err (!%p1476_p2)
}
  0x2b   : > { %s1549_s22 = smov 64   ;;  %s1550_s30 = smov 4  }
  0x2c   : > { %1390 = dma.hbm_to_vmem [thread:$0]  (%p1649_p5), %s1677_s12, 512, %s1679_s20, %s319_s21, %s1549_s22, %s1549_s22, %s1550_s30  }
  0x2d   : > { %345 = sbr.rel (!%p1649_p5) target bundleno = 52 (0x34), region = 52  ;;  %s1309_s28 = sshll.u32 (%p1649_p5), %s1670_s27, 3 }
  0x2e   : > { %s1310_s11 = sshll.u32 (%p1649_p5), %s1546_s16, 2  ;;  %s349_s18 = scalar_lea.vmem (%p1649_p5), [#allocation5], %s1309_s28 }
  0x2f   : > { %s351_s19 = scalar_lea.vmem (%p1649_p5), %s1917_s2, %s1310_s11 }
  0x30   : > { %v367_v0 = vld [vmem:[%s351_s19] sm:$0xf] (%p1649_p5)  ;;  %v369_v1 = vld [vmem:[%s351_s19 + $0x8] sm:$0xf] (%p1649_p5) }
  0x31   : > { %368 = vst [vmem:[%s349_s18] sm:$0xf] (%p1649_p5), %v367_v0  ;;  %370 = vst [vmem:[%s349_s18 + $0x4] sm:$0xf] (%p1649_p5), %v369_v1 }
  0x34 PF: > { %397 = sbr.rel (!%p1649_p5) target bundleno = 59 (0x3b), region = 93  ;;  %s1311_s12 = sshll.u32 (%p1649_p5), %s1670_s27, 4 }
  0x35   : > { %s1312_s20 = sshll.u32 (%p1649_p5), %s1546_s16, 3  ;;  %s401_s11 = scalar_lea.vmem (%p1649_p5), [#allocation6], %s1311_s12 }
  0x36   : > { %s403_s30 = scalar_lea.vmem (%p1649_p5), %s1918_s3, %s1312_s20 }
  0x37   : > { %v433_v2 = vld [vmem:[%s403_s30] sm:$0xff] (%p1649_p5)  ;;  %v435_v3 = vld [vmem:[%s403_s30 + $0x10] sm:$0xff] (%p1649_p5) }
  0x38   : > { %434 = vst [vmem:[%s401_s11] sm:$0xff] (%p1649_p5), %v433_v2  ;;  %436 = vst [vmem:[%s401_s11 + $0x8] sm:$0xff] (%p1649_p5), %v435_v3 }
  0x3b PF: > { %p1313_p9 = scmp.ge.s32.totalorder %s1546_s16, 1  ;;  %p441_p10 = scmp.lt.s32.totalorder %s1546_s16, 3 }
  0x3d   : > { %p442_p5 = pnand %p1313_p9, %p441_p10 }
  0x3e   : > { %s1722_s23 = sand.u32 (!%p442_p5), 1, %s1538_s14  }
  0x3f   : > { %445 = sbr.rel (%p442_p5) target bundleno = 1030 (0x406), region = 131  ;;  %s1314_s27 = sshll.u32 (!%p442_p5), %s1722_s23, 5 }
  0x40   : > { %s448_s28 = scalar_lea.sflag (!%p442_p5), [#allocation3], %s1722_s23  ;;  %s1726_s29 = scalar_lea.vmem (!%p442_p5), [#allocation2], %s1314_s27 }
  0x46   : > { %1525 = dma.done.wait (%p1653_p6), %s448_s28, 512  }
  0x47   : > { %1527 = vsyncadd (%p1653_p6), %s448_s28, 4294966784  ;;  %v537_v4 = vlaneseq  ;;  %s1315_s15 = sshll.u32 %s1722_s23, 3  ;;  %v1551_v5 = vmov 0   ;;  %s1316_s24 = sshll.u32 %s1722_s23, 4  ;;  %v1438_v37 = vld [vmem:[%s1919_s4] sm:$0xff]   ;;  %v1552_v38 = vmov 0.0  }
  0x48   : > { %1437 = vset.pattern.permute.xlu1 %v1551_v5  ;;  %1436 = vset.pattern.permute.xlu0 %v1551_v5  ;;  %s459_s19 = scalar_lea.vmem [#allocation5], %s1315_s15  ;;  %s466_s18 = scalar_lea.vmem [#allocation6], %s1316_s24  ;;  %v1439_v39 = vld [vmem:[%s1919_s4 + $0x8] sm:$0xff]   ;;  %vm1553_vm0 = vmmov 0   ;;  %v520_v40 = vld [vmem:[%s1726_s29] sm:$0xf] }
  0x49   : > { %v538_v6 = vshrl.u32 %v537_v4, 7  ;;  %v529_v8 = vld [vmem:[%s459_s19 + $0x4] sm:$0xf]  ;;  %v528_v9 = vld [vmem:[%s459_s19] sm:$0xf]  ;;  %v530_v36 = vld [vmem:[%s466_s18] sm:$0xff]  ;;  %1358 = vmatprep.subr.bf16.mxu0 %v1552_v38  ;;  %1366 = vmatprep.subr.bf16.mxu1 %v1552_v38 }
  0x4a   : > { %v670_v11 = vpack.i.b16 %v529_v8, %v529_v8  ;;  %v535_v12 = vpack.i.b16 %v528_v9, %v528_v9  ;;  %v679_v13 = vshrl.u32 %v529_v8, 16  ;;  %v544_v14 = vshrl.u32 %v528_v9, 16  ;;  %v531_v35 = vld [vmem:[%s466_s18 + $0x8] sm:$0xff]  ;;  %1359 = vmatpush3.bf16.msra.mxu0 %v1438_v37  ;;  %1362 = vmatprep.mubr.msk.bf16.mxu0 %vm1553_vm0, %v1552_v38  ;;  %v521_v56 = vld [vmem:[%s1726_s29 + $0x4] sm:$0xf]  ;;  %p515_p6 = scmp.lt.s32.totalorder %s1631_s17, 1 }
  0x4b   : > { %v1733_v7 = vsub.s32 0, %v538_v6  ;;  %v1737_v10 = vsub.s32 1, %v538_v6  ;;  %v1747_v25 = vsub.s32 2, %v538_v6  ;;  %v584_v30 = vsub.s32 3, %v538_v6  ;;  %1360 = vmatprep.subr.bf16.mxu0 %v1552_v38  ;;  %1370 = vmatprep.mubr.msk.bf16.mxu1 %vm1553_vm0, %v1552_v38  ;;  %v522_v45 = vld [vmem:[%s1726_s29 + $0x8] sm:$0xf] }
  0x4c   : > { %v680_v19 = vpack.i.b16 %v679_v13, %v679_v13  ;;  %v545_v20 = vpack.i.b16 %v544_v14, %v544_v14  ;;  %vm612_vm1 = vcmask 261120   ;;  %v523_v5 = vld [vmem:[%s1726_s29 + $0xc] sm:$0xf]  ;;  %vm811_vm2 = vcmask 1041409   ;;  %s516_s30 = scalar_select %p515_p6, %s1631_s17, 1 }
  0x4d   : > { %v675_v15 = vrot.slane %v670_v11, %v1733_v7  ;;  %v540_v16 = vrot.slane %v535_v12, %v1733_v7  ;;  %v692_v17 = vrot.slane %v670_v11, %v1737_v10  ;;  %v557_v18 = vrot.slane %v535_v12, %v1737_v10  ;;  %s1342_s11 = sshll.u32 %s1631_s17, 7  ;;  %s513_s27 = scalar_lea.vmem [#allocation7], %s1315_s15 }
  0x4e   : > { %v685_v21 = vrot.slane %v680_v19, %v1733_v7  ;;  %v550_v22 = vrot.slane %v545_v20, %v1733_v7  ;;  %v699_v23 = vrot.slane %v680_v19, %v1737_v10  ;;  %v564_v24 = vrot.slane %v545_v20, %v1737_v10  ;;  %1361 = vmatpush3.bf16.msra.mxu0 %v1439_v39  ;;  %s1318_s28 = sshll.u32 %s516_s30, 2  ;;  %s1172_s17 = scalar_lea.sflag [#allocation4], %s1722_s23 }
  0x4f   : > { %677 = vbcast.lane.c.b16.xlu1 %v675_v15, 256  ;;  %542 = vbcast.lane.c.b16.xlu0 %v540_v16, 256  ;;  %v706_v26 = vrot.slane %v670_v11, %v1747_v25  ;;  %v571_v27 = vrot.slane %v535_v12, %v1747_v25  ;;  %v713_v28 = vrot.slane %v680_v19, %v1747_v25  ;;  %vm813_vm3 = vcmask 1042434   ;;  %s518_s24 = scalar_lea.vmem %s1916_s1, %s1318_s28  ;;  %s1185_s28 = sshll.u32 %s513_s27, 4  ;;  %s1873_s28 = int_to_ptr.vmem [resolvable:$true] %s1185_s28 }
  0x50   : > { %v578_v29 = vrot.slane %v545_v20, %v1747_v25  ;;  %v720_v31 = vrot.slane %v670_v11, %v584_v30  ;;  %v585_v32 = vrot.slane %v535_v12, %v584_v30  ;;  %v727_v33 = vrot.slane %v680_v19, %v584_v30  ;;  %1374 = vmatprep.subr.bf16.mxu0 %v1552_v38  ;;  %s1480_s18 = scalar_lea.vmem %s1873_s28, 128  ;;  %p1938_p0 = scmp.ne.s32.totalorder %s1936_s25, 0 }
  0x51   : > { %v592_v34 = vrot.slane %v545_v20, %v584_v30  ;;  %v524_v30 = vld [vmem:[%s1726_s29 + $0x10] sm:$0xf]  ;;  %vm815_vm4 = vcmask 1043459   ;;  %vm817_vm5 = vcmask 1044484   ;;  %vm819_vm6 = vcmask 1045509   ;;  %p1481_p11 = scmp.ne.s32.totalorder %s1873_s28, %s1480_s18  ;;  %s1554_s15 = smov [#allocation7]  }
  0x52   : > { %vm821_vm7 = vcmask 1046534   ;;  %vm823_vm8 = vcmask 1047559   ;;  %s1484_s12 = sshll.u32 %s1554_s15, 4  ;;  %s1485_s12 = int_to_ptr.vmem [resolvable:$false] %s1484_s12 }
  0x53   : > { %694 = vbcast.lane.c.b16.xlu1 %v692_v17, 256  ;;  %559 = vbcast.lane.c.b16.xlu0 %v557_v18, 256  ;;  %p1482_p3 = pnand %p1481_p11, %p1938_p0  ;;  %s1486_s20 = scalar_lea.vmem %s1485_s12, 256 }
  0x54   : > { %p1487_p7 = scmp.lt.s32.totalorder %s1873_s28, %s1485_s12  ;;  %p1488_p8 = scmp.lt.s32.totalorder %s1486_s20, %s1480_s18 }
  0x55   : > { %p1483_p4 = pneg %p1482_p3 }
  0x56   : > { %p1489_p12 = por %p1488_p8, %p1487_p7 }
  0x57   : > { %687 = vbcast.lane.c.b16.xlu1 %v685_v21, 256  ;;  %552 = vbcast.lane.c.b16.xlu0 %v550_v22, 256 }
  0x58   : > { %p1490_p13 = pnand %p1489_p12, %p1483_p4 }
  0x5b   : > { %701 = vbcast.lane.c.b16.xlu1 %v699_v23, 256  ;;  %566 = vbcast.lane.c.b16.xlu0 %v564_v24, 256 }
  0x5f   : > { %708 = vbcast.lane.c.b16.xlu1 %v706_v26, 256  ;;  %573 = vbcast.lane.c.b16.xlu0 %v571_v27, 256 }
  0x63   : > { %715 = vbcast.lane.c.b16.xlu1 %v713_v28, 256  ;;  %580 = vbcast.lane.c.b16.xlu0 %v578_v29, 256 }
  0x67   : > { %722 = vbcast.lane.c.b16.xlu1 %v720_v31, 256  ;;  %587 = vbcast.lane.c.b16.xlu0 %v585_v32, 256 }
  0x6b   : > { %729 = vbcast.lane.c.b16.xlu1 %v727_v33, 256  ;;  %594 = vbcast.lane.c.b16.xlu0 %v592_v34, 256 }
  0x6f   : > { %849 = vperm.xlu1 %1437, %v531_v35   ;;  %844 = vperm.xlu0 %1436, %v530_v36  }
  0xc1   : > { %v678_v41 = vpop.permute.xlu1 %677  ;;  %v543_v42 = vpop.permute.xlu0 %542 }
  0xc2   : > { %v731_v43 = vmul.bf16 %v678_v41, %v520_v40  ;;  %v596_v44 = vmul.bf16 %v543_v42, %v520_v40 }
  0xc4   : > { %v739_v46 = vunpack.c.l.bf16 %v731_v43  ;;  %v604_v47 = vunpack.c.l.bf16 %v596_v44 }
  0xc5   : > { %v695_v48 = vpop.permute.xlu1 %694  ;;  %v560_v49 = vpop.permute.xlu0 %559 }
  0xc6   : > { %v747_v50 = vsel %vm612_vm1, %v739_v46, 0.0  ;;  %v613_v51 = vsel %vm612_vm1, %v604_v47, 0.0  ;;  %v733_v52 = vmul.bf16 %v695_v48, %v522_v45  ;;  %v598_v53 = vmul.bf16 %v560_v49, %v522_v45  ;;  %v525_v45 = vld [vmem:[%s1726_s29 + $0x14] sm:$0xf] }
  0xc7   : > { %v748_v54 = vrot.slane %v747_v50, 4  ;;  %v614_v55 = vrot.slane %v613_v51, 4 }
  0xc8   : > { %v741_v57 = vunpack.c.l.bf16 %v733_v52  ;;  %v606_v58 = vunpack.c.l.bf16 %v598_v53 }
  0xc9   : > { %v749_v59 = vadd.f32 %v748_v54, %v747_v50  ;;  %v615_v60 = vadd.f32 %v614_v55, %v613_v51  ;;  %v688_v61 = vpop.permute.xlu1 %687  ;;  %v553_v62 = vpop.permute.xlu0 %552 }
  0xca   : > { %v761_v63 = vsel %vm612_vm1, %v741_v57, 0.0  ;;  %v627_v0 = vsel %vm612_vm1, %v606_v58, 0.0  ;;  %v732_v1 = vmul.bf16 %v688_v61, %v521_v56  ;;  %v597_v2 = vmul.bf16 %v553_v62, %v521_v56 }
  0xcb   : > { %v762_v3 = vrot.slane %v761_v63, 4  ;;  %v628_v4 = vrot.slane %v627_v0, 4  ;;  %v750_v9 = vrot.slane %v749_v59, 2  ;;  %v616_v11 = vrot.slane %v615_v60, 2 }
  0xcc   : > { %v740_v6 = vunpack.c.l.bf16 %v732_v1  ;;  %v605_v8 = vunpack.c.l.bf16 %v597_v2 }
  0xcd   : > { %v763_v12 = vadd.f32 %v762_v3, %v761_v63  ;;  %v629_v13 = vadd.f32 %v628_v4, %v627_v0  ;;  %v702_v14 = vpop.permute.xlu1 %701  ;;  %v567_v15 = vpop.permute.xlu0 %566  ;;  %v751_v27 = vadd.f32 %v750_v9, %v749_v59  ;;  %v617_v28 = vadd.f32 %v616_v11, %v615_v60 }
  0xce   : > { %v754_v16 = vsel %vm612_vm1, %v740_v6, 0.0  ;;  %v620_v17 = vsel %vm612_vm1, %v605_v8, 0.0  ;;  %v734_v18 = vmul.bf16 %v702_v14, %v523_v5  ;;  %v599_v19 = vmul.bf16 %v567_v15, %v523_v5 }
  0xcf   : > { %v764_v20 = vrot.slane %v763_v12, 2  ;;  %v630_v21 = vrot.slane %v629_v13, 2  ;;  %v755_v22 = vrot.slane %v754_v16, 4  ;;  %v621_v23 = vrot.slane %v620_v17, 4 }
  0xd0   : > { %v742_v24 = vunpack.c.l.bf16 %v734_v18  ;;  %v607_v26 = vunpack.c.l.bf16 %v599_v19  ;;  %v752_v46 = vrot.slane %v751_v27, 1  ;;  %v618_v47 = vrot.slane %v617_v28, 1 }
  0xd1   : > { %v709_v29 = vpop.permute.xlu1 %708  ;;  %v574_v31 = vpop.permute.xlu0 %573  ;;  %v756_v32 = vadd.f32 %v755_v22, %v754_v16  ;;  %v622_v33 = vadd.f32 %v621_v23, %v620_v17  ;;  %v765_v36 = vadd.f32 %v764_v20, %v763_v12  ;;  %v631_v37 = vadd.f32 %v630_v21, %v629_v13  ;;  %v526_v16 = vld [vmem:[%s1726_s29 + $0x18] sm:$0xf]  ;;  %v527_v21 = vld [vmem:[%s1726_s29 + $0x1c] sm:$0xf] }
  0xd2   : > { %v768_v34 = vsel %vm612_vm1, %v742_v24, 0.0  ;;  %v634_v35 = vsel %vm612_vm1, %v607_v26, 0.0  ;;  %v735_v43 = vmul.bf16 %v709_v29, %v524_v30  ;;  %v600_v44 = vmul.bf16 %v574_v31, %v524_v30 }
  0xd3   : > { %v769_v39 = vrot.slane %v768_v34, 4  ;;  %v635_v40 = vrot.slane %v634_v35, 4  ;;  %v757_v41 = vrot.slane %v756_v32, 2  ;;  %v623_v42 = vrot.slane %v622_v33, 2 }
  0xd4   : > { %v743_v54 = vunpack.c.l.bf16 %v735_v43  ;;  %v608_v55 = vunpack.c.l.bf16 %v600_v44  ;;  %v766_v56 = vrot.slane %v765_v36, 1  ;;  %v632_v57 = vrot.slane %v631_v37, 1 }
  0xd5   : > { %v770_v48 = vadd.f32 %v769_v39, %v768_v34  ;;  %v636_v49 = vadd.f32 %v635_v40, %v634_v35  ;;  %v716_v50 = vpop.permute.xlu1 %715  ;;  %v581_v51 = vpop.permute.xlu0 %580  ;;  %v758_v52 = vadd.f32 %v757_v41, %v756_v32  ;;  %v624_v53 = vadd.f32 %v623_v42, %v622_v33 }
  0xd6   : > { %v736_v58 = vmul.bf16 %v716_v50, %v525_v45  ;;  %v601_v59 = vmul.bf16 %v581_v51, %v525_v45  ;;  %v775_v62 = vsel %vm612_vm1, %v743_v54, 0.0  ;;  %v641_v63 = vsel %vm612_vm1, %v608_v55, 0.0 }
  0xd7   : > { %v771_v60 = vrot.slane %v770_v48, 2  ;;  %v637_v61 = vrot.slane %v636_v49, 2  ;;  %v759_v0 = vrot.slane %v758_v52, 1  ;;  %v625_v1 = vrot.slane %v624_v53, 1 }
  0xd8   : > { %v776_v2 = vrot.slane %v775_v62, 4  ;;  %v642_v3 = vrot.slane %v641_v63, 4  ;;  %v753_v6 = vadd.f32 %v752_v46, %v751_v27  ;;  %v619_v8 = vadd.f32 %v618_v47, %v617_v28 }
  0xd9   : > { %v723_v4 = vpop.permute.xlu1 %722  ;;  %v588_v5 = vpop.permute.xlu0 %587  ;;  %v744_v9 = vunpack.c.l.bf16 %v736_v58  ;;  %v609_v11 = vunpack.c.l.bf16 %v601_v59  ;;  %v1784_v12 = vadd.f32 %v766_v56, %v765_v36  ;;  %v1786_v13 = vadd.f32 %v632_v57, %v631_v37 }
  0xda   : > { %v777_v14 = vadd.f32 %v776_v2, %v775_v62  ;;  %v643_v15 = vadd.f32 %v642_v3, %v641_v63  ;;  %v772_v17 = vadd.f32 %v771_v60, %v770_v48  ;;  %v638_v18 = vadd.f32 %v637_v61, %v636_v49 }
  0xdb   : > { %v782_v19 = vsel %vm612_vm1, %v744_v9, 0.0  ;;  %v648_v20 = vsel %vm612_vm1, %v609_v11, 0.0  ;;  %v760_v22 = vadd.f32 %v759_v0, %v758_v52  ;;  %v626_v23 = vadd.f32 %v625_v1, %v624_v53 }
  0xdc   : > { %v778_v24 = vrot.slane %v777_v14, 2  ;;  %v644_v26 = vrot.slane %v643_v15, 2  ;;  %v783_v29 = vrot.slane %v782_v19, 4  ;;  %v649_v30 = vrot.slane %v648_v20, 4 }
  0xdd   : > { %v730_v27 = vpop.permute.xlu1 %729  ;;  %v595_v28 = vpop.permute.xlu0 %594  ;;  %v737_v31 = vmul.bf16 %v723_v4, %v526_v16  ;;  %v602_v32 = vmul.bf16 %v588_v5, %v526_v16  ;;  %v773_v42 = vrot.slane %v772_v17, 1  ;;  %v639_v43 = vrot.slane %v638_v18, 1 }
  0xde   : > { %v779_v33 = vadd.f32 %v778_v24, %v777_v14  ;;  %v645_v34 = vadd.f32 %v644_v26, %v643_v15  ;;  %v738_v35 = vmul.bf16 %v730_v27, %v527_v21  ;;  %v603_v36 = vmul.bf16 %v595_v28, %v527_v21 }
  0xdf   : > { %v784_v37 = vadd.f32 %v783_v29, %v782_v19  ;;  %v650_v39 = vadd.f32 %v649_v30, %v648_v20  ;;  %v745_v40 = vunpack.c.l.bf16 %v737_v31  ;;  %v610_v41 = vunpack.c.l.bf16 %v602_v32 }
  0xe0   : > { %v746_v44 = vunpack.c.l.bf16 %v738_v35  ;;  %v611_v45 = vunpack.c.l.bf16 %v603_v36  ;;  %v780_v50 = vrot.slane %v779_v33, 1  ;;  %v646_v51 = vrot.slane %v645_v34, 1 }
  0xe1   : > { %v785_v46 = vrot.slane %v784_v37, 2  ;;  %v651_v47 = vrot.slane %v650_v39, 2  ;;  %v789_v48 = vsel %vm612_vm1, %v745_v40, 0.0  ;;  %v655_v49 = vsel %vm612_vm1, %v610_v41, 0.0 }
  0xe2   : > { %v790_v52 = vrot.slane %v789_v48, 4  ;;  %v656_v53 = vrot.slane %v655_v49, 4  ;;  %v796_v56 = vsel %vm612_vm1, %v746_v44, 0.0  ;;  %v662_v57 = vsel %vm612_vm1, %v611_v45, 0.0 }
  0xe3   : > { %v786_v54 = vadd.f32 %v785_v46, %v784_v37  ;;  %v652_v55 = vadd.f32 %v651_v47, %v650_v39  ;;  %v797_v60 = vrot.slane %v796_v56, 4  ;;  %v663_v61 = vrot.slane %v662_v57, 4  ;;  %v1319_v47 = vld [vmem:[%s1920_s5] ss:$0 sm:$0xff] }
  0xe4   : > { %v791_v58 = vadd.f32 %v790_v52, %v789_v48  ;;  %v657_v59 = vadd.f32 %v656_v53, %v655_v49  ;;  %v834_v62 = vsel %vm811_vm2, %v760_v22, %v753_v6  ;;  %v812_v63 = vsel %vm811_vm2, %v626_v23, %v619_v8 }
  0xe5   : > { %v787_v0 = vrot.slane %v786_v54, 1  ;;  %v653_v1 = vrot.slane %v652_v55, 1  ;;  %v798_v4 = vadd.f32 %v797_v60, %v796_v56  ;;  %v664_v5 = vadd.f32 %v663_v61, %v662_v57 }
  0xe6   : > { %v792_v2 = vrot.slane %v791_v58, 2  ;;  %v658_v3 = vrot.slane %v657_v59, 2  ;;  %v774_v9 = vadd.f32 %v773_v42, %v772_v17  ;;  %v640_v11 = vadd.f32 %v639_v43, %v638_v18 }
  0xe7   : > { %v781_v14 = vadd.f32 %v780_v50, %v779_v33  ;;  %v647_v15 = vadd.f32 %v646_v51, %v645_v34  ;;  %v799_v20 = vrot.slane %v798_v4, 2  ;;  %v665_v21 = vrot.slane %v664_v5, 2 }
  0xe8   : > { %v793_v16 = vadd.f32 %v792_v2, %v791_v58  ;;  %v659_v19 = vadd.f32 %v658_v3, %v657_v59  ;;  %v788_v24 = vadd.f32 %v787_v0, %v786_v54  ;;  %v654_v26 = vadd.f32 %v653_v1, %v652_v55  ;;  %v532_v54 = vld [vmem:[%s518_s24] sm:$0xf]  ;;  %s1871_s24 = scalar_lea.hbm %s1925_s10, %s1342_s11 }
  0xe9   : > { %v835_v6 = vsel %vm813_vm3, %v1784_v12, %v834_v62  ;;  %v814_v8 = vsel %vm813_vm3, %v1786_v13, %v812_v63  ;;  %v800_v27 = vadd.f32 %v799_v20, %v798_v4  ;;  %v666_v28 = vadd.f32 %v665_v21, %v664_v5 }
  0xea   : > { %v794_v22 = vrot.slane %v793_v16, 1  ;;  %v660_v23 = vrot.slane %v659_v19, 1  ;;  %v836_v17 = vsel %vm815_vm4, %v774_v9, %v835_v6  ;;  %v816_v18 = vsel %vm815_vm4, %v640_v11, %v814_v8  ;;  %v945_v6 = vld [vmem:[%s1922_s7] sm:$0x7] }
  0xeb   : > { %v801_v31 = vrot.slane %v800_v27, 1  ;;  %v667_v32 = vrot.slane %v666_v28, 1  ;;  %v837_v12 = vsel %vm817_vm5, %v781_v14, %v836_v17  ;;  %v818_v33 = vsel %vm817_vm5, %v647_v15, %v816_v18  ;;  %v1440_v14 = vld [vmem:[%s1923_s8 + $0x10] sm:$0xff]   ;;  %v1441_v15 = vld [vmem:[%s1923_s8] sm:$0xff]  }
  0xec   : > { %v795_v29 = vadd.f32 %v794_v22, %v793_v16  ;;  %v661_v30 = vadd.f32 %v660_v23, %v659_v19  ;;  %v838_v35 = vsel %vm819_vm6, %v788_v24, %v837_v12  ;;  %v820_v39 = vsel %vm819_vm6, %v654_v26, %v818_v33  ;;  %1367 = vmatpush3.bf16.msra.mxu1 %v1440_v14  ;;  %v1442_v16 = vld [vmem:[%s1923_s8 + $0x18] sm:$0xff]   ;;  %v1443_v19 = vld [vmem:[%s1923_s8 + $0x8] sm:$0xff]   ;;  %v944_v26 = vld [vmem:[%s1921_s6] sm:$0x7] }
  0xed   : > { %v802_v34 = vadd.f32 %v801_v31, %v800_v27  ;;  %v668_v37 = vadd.f32 %v667_v32, %v666_v28  ;;  %v533_v55 = vunpack.c.l.bf16 %v532_v54  ;;  %1368 = vmatprep.subr.bf16.mxu1 %v1552_v38  ;;  %v962_v8 = vrot.slane %v944_v26, %v1737_v10 }
  0xee   : > { %v850_v13 = vpop.permute.xlu1 %849  ;;  %v845_v36 = vpop.permute.xlu0 %844  ;;  %v839_v40 = vsel %vm821_vm7, %v795_v29, %v838_v35  ;;  %v822_v41 = vsel %vm821_vm7, %v661_v30, %v820_v39  ;;  %v950_v22 = vrot.slane %v944_v26, %v1733_v7  ;;  %v967_v28 = vrot.slane %v945_v6, %v1737_v10 }
  0xef   : > { %v840_v42 = vsel %vm823_vm8, %v802_v34, %v839_v40  ;;  %v824_v43 = vsel %vm823_vm8, %v668_v37, %v822_v41  ;;  %v955_v18 = vrot.slane %v945_v6, %v1733_v7  ;;  %v974_v32 = vrot.slane %v944_v26, %v1747_v25  ;;  %v1445_v7 = vld [vmem:[%s1923_s8 + $0x28] sm:$0xff]  }
  0xf0   : > { %v853_v44 = vmul.f32 %v850_v13, %v840_v42  ;;  %v852_v45 = vmul.f32 %v845_v36, %v824_v43  ;;  %1369 = vmatpush3.bf16.msra.mxu1 %v1442_v16  ;;  %v1444_v13 = vld [vmem:[%s1923_s8 + $0x20] sm:$0xff]   ;;  %v979_v37 = vrot.slane %v945_v6, %v1747_v25 }
  0xf1   : > { %1382 = vmatprep.subr.bf16.mxu1 %v1552_v38 }
  0xf2   : > { %v854_v46 = vpack.c.bf16 %v853_v44, %v852_v45 }
  0xf4   : > { %1363 = vmatmul.mubr.msk.bf16.vlgmr.msra.gmra.mrb[0].mxu0 %vm612_vm1, %v854_v46 }
  0xf5   : > { %1378 = vmatprep.mubr.msk.bf16.mxu0 %vm1553_vm0, %v1552_v38  ;;  %1375 = vmatpush3.bf16.msra.mxu0 %v1441_v15 }
  0xf6   : > { %1376 = vmatprep.subr.bf16.mxu0 %v1552_v38 }
  0xf9   : > { %1377 = vmatpush3.bf16.msra.mxu0 %v1443_v19 }
 0x1c7   : > { %v915_v48 = vpop.f32.mrb[0].mxu0 }
 0x1c8   : > { %v916_v49 = vadd.f32 %v1319_v47, %v915_v48  ;;  %v1364_v50 = vpop.f32.mrb[1].mxu0 }
 0x1c9   : > { %v918_v51 = vpop.f32.mrb[2].mxu0 }
 0x1ca   : > { %1446 = vtanh.f32 %v916_v49  ;;  %v919_v52 = vadd.f32 %v1319_v47, %v918_v51  ;;  %v1365_v53 = vpop.f32.mrb[3].mxu0 }
 0x1cc   : > { %1448 = vtanh.f32 %v919_v52 }
 0x1d4   : > { %v1447_v56 = vpop.eup %1446 }
 0x1d5   : > { %v924_v57 = vadd.f32 %v1447_v56, %v533_v55 }
 0x1d6   : > { %v1449_v58 = vpop.eup %1448 }
 0x1d7   : > { %v925_v59 = vadd.f32 %v1449_v58, %v924_v57 }
 0x1d9   : > { %v926_v60 = vsel %vm612_vm1, %v925_v59, 0.0 }
 0x1da   : > { %927 = vadd.xlane.f32.xlu1 %v926_v60 }
 0x267   : > { %v928_v61 = vpop.xlane.xlu1 %927 }
 0x268   : > { %v929_v62 = vmul.f32 0.010416667, %v928_v61 }
 0x26a   : > { %v930_v63 = vsub.f32 %v533_v55, %v929_v62  ;;  %v931_v0 = vsub.f32 %v1447_v56, %v929_v62  ;;  %v932_v1 = vsub.f32 %v1449_v58, %v929_v62 }
 0x26c   : > { %v933_v2 = vmul.f32 %v930_v63, %v930_v63  ;;  %v934_v3 = vmul.f32 %v931_v0, %v931_v0  ;;  %v936_v5 = vmul.f32 %v932_v1, %v932_v1 }
 0x26e   : > { %v935_v4 = vadd.f32 %v934_v3, %v933_v2 }
 0x270   : > { %v937_v9 = vadd.f32 %v936_v5, %v935_v4 }
 0x272   : > { %v938_v11 = vsel %vm612_vm1, %v937_v9, 0.0 }
 0x273   : > { %939 = vadd.xlane.f32.xlu0 %v938_v11 }
 0x300   : > { %v940_v20 = vpop.xlane.xlu0 %939 }
 0x301   : > { %v941_v21 = vmul.f32 0.010416667, %v940_v20 }
 0x303   : > { %v942_v24 = vadd.f32 1e-05, %v941_v21 }
 0x305   : > { %1450 = vrsqrt.f32 %v942_v24 }
 0x30f   : > { %v1451_v23 = vpop.eup %1450 }
 0x310   : > { %v958_v27 = vmul.f32 %v1451_v23, %v931_v0  ;;  %v946_v17 = vmul.f32 %v1451_v23, %v930_v63  ;;  %v970_v31 = vmul.f32 %v1451_v23, %v932_v1 }
 0x312   : > { %v963_v29 = vmul.f32 %v962_v8, %v958_v27  ;;  %v951_v30 = vmul.f32 %v950_v22, %v946_v17  ;;  %v975_v36 = vmul.f32 %v974_v32, %v970_v31 }
 0x314   : > { %v968_v12 = vadd.f32 %v967_v28, %v963_v29  ;;  %v956_v33 = vadd.f32 %v955_v18, %v951_v30  ;;  %v980_v10 = vadd.f32 %v979_v37, %v975_v36 }
 0x316   : > { %v969_v34 = vpack.c.bf16 %v968_v12, %v968_v12  ;;  %v957_v35 = vpack.c.bf16 %v956_v33, %v956_v33  ;;  %v981_v39 = vpack.c.bf16 %v980_v10, %v980_v10 }
 0x318   : > { %1371 = vmatmul.mubr.msk.bf16.vlgmr.msra.gmra.mrb[0].mxu1 %vm612_vm1, %v969_v34  ;;  %1379 = vmatmul.mubr.msk.bf16.vlgmr.msra.gmra.mrb[4].mxu0 %vm612_vm1, %v957_v35 }
 0x319   : > { %1383 = vmatpush3.bf16.msra.mxu1 %v1444_v13  ;;  %1386 = vmatprep.mubr.msk.bf16.mxu1 %vm1553_vm0, %v1552_v38 }
 0x31a   : > { %1384 = vmatprep.subr.bf16.mxu1 %v1552_v38  ;;  %v1340_v38 = vld [vmem:[%s1924_s9] ss:$0 sm:$0xff] }
 0x31d   : > { %1385 = vmatpush3.bf16.msra.mxu1 %v1445_v7 }
 0x320   : > { %1387 = vmatmul.mubr.msk.bf16.vlgmr.msra.gmra.mrb[4].mxu1 %vm612_vm1, %v981_v39 }
 0x3eb   : > { %v1040_v25 = vpop.f32.mrb[0].mxu1  ;;  %v1095_v40 = vpop.f32.mrb[4].mxu0 }
 0x3ec   : > { %v1096_v41 = vadd.f32 %v1095_v40, %v1040_v25  ;;  %v1372_v42 = vpop.f32.mrb[1].mxu1  ;;  %v1380_v43 = vpop.f32.mrb[5].mxu0 }
 0x3ed   : > { %v1043_v44 = vpop.f32.mrb[2].mxu1  ;;  %v1098_v45 = vpop.f32.mrb[6].mxu0 }
 0x3ee   : > { %v1373_v46 = vpop.f32.mrb[3].mxu1  ;;  %v1381_v47 = vpop.f32.mrb[7].mxu0 }
 0x3f3   : > { %v1155_v48 = vpop.f32.mrb[4].mxu1 }
 0x3f4   : > { %v1161_v49 = vadd.f32 %v1155_v48, %v1096_v41  ;;  %v1388_v50 = vpop.f32.mrb[5].mxu1 }
 0x3f5   : > { %v1158_v51 = vpop.f32.mrb[6].mxu1 }
 0x3f6   : > { %v1169_v52 = vadd.f32 %v1340_v38, %v1161_v49  ;;  %v1389_v53 = vpop.f32.mrb[7].mxu1 }
 0x3f8   : > { %1170 = vst [vmem:[%s513_s27] sm:$0xff] %v1169_v52 }
 0x3f9   : > { %1493 = shalt.err (!%p1490_p13)
}
 0x3fa   : > { %s1494_s23 = scalar_lea.hbm %s1871_s24, 128  ;;  %s1498_s30 = scalar_lea.hbm %s1925_s10, 256 }
 0x3fb   : > { %p1495_p1 = scmp.ne.s32.totalorder %s1871_s24, %s1494_s23  ;;  %p1499_p10 = scmp.lt.u32.totalorder %s1871_s24, %s1925_s10 }
 0x3fc   : > { %p1500_p5 = scmp.lt.u32.totalorder %s1498_s30, %s1494_s23  ;;  %p1502_p11 = scmp.lt.u32.totalorder %s1494_s23, %s1871_s24 }
 0x3fd   : > { %p1496_p2 = pnand %p1495_p1, %p1938_p0 }
 0x3fe   : > { %p1501_p6 = por %p1500_p5, %p1499_p10 }
 0x3ff   : > { %p1497_p9 = pneg %p1496_p2 }
 0x400   : > { %p1503_p3 = por %p1502_p11, %p1501_p6 }
 0x402   : > { %p1504_p4 = pnand %p1503_p3, %p1497_p9 }
 0x404   : > { %1507 = shalt.err (!%p1504_p4)
}
 0x405   : > { %1392 = dma.vmem_to_hbm [thread:$0]  (%p1938_p0), %s1873_s28, 128, %s1871_s24, %s1172_s17  }
 0x406 PF: > { %s1197_s29 = sand.u32 1, %s1534_s13   ;;  %p1939_p7 = scmp.ne.s32.totalorder %s1937_s26, 0 }
 0x407   : > { %p1940_p8 = scmp.ge.s32.totalorder %s1546_s16, 2  ;;  %s1198_s19 = scalar_lea.sflag [#allocation4], %s1197_s29 }
 0x409   : > { %p1395_p12 = pnand %p1940_p8, %p1939_p7 }
 0x40b   : > { %1529 = dma.done.wait (!%p1395_p12), %s1198_s19, 128  }
 0x40c   : > { %1531 = vsyncadd (!%p1395_p12), %s1198_s19, 4294967168  ;;  %s1941_s16 = sld [smem:[#allocation11_spill]]  ;;  %s1942_s18 = sld [smem:[#allocation10_spill]] }
 0x40d   : > { %s1943_s15 = sld [smem:[#allocation12_spill]]  ;;  %s1944_s13 = smov %s1538_s14 }
 0x412   : > { %p23_p13 = scmp.ge.s32.totalorder %s1941_s16, 4   ;;  %s1945_s14 = smov %s1942_s18 }
 0x414   :  { %25 = sbr.rel (!%p23_p13) target bundleno = 5 (0x5), region = 205 }
 0x41b   :  { %1203 = vsyncpa [#allocation3], 1 }
 0x41c   :  { %1205 = vsyncpa [#allocation3 + $0x1], 1 }
 0x41d   :  { %1206 = vsyncpa [#allocation4], 1 }
 0x41e   :  { %1208 = vsyncpa [#allocation4 + $0x1], 1 }

</bundles_post_ra>
